<compile_context>
chip_gen: v7x
topology: tpu7x:2x2x1
jax: 0.10.0
libtpu: 0.0.40
codegen_flags: <defaults>
</compile_context>

<pallas_src>
import functools
import math

import jax
import jax.numpy as jnp
from jax import lax
from jax.experimental import pallas as pl
from jax.experimental.pallas import tpu as pltpu

_MIB = 1024 * 1024


# ------------------------------ helpers ------------------------------------ #
def _vmem_budget_bytes():
    """Generation-aware VMEM budget (~70% of physical capacity)."""
    try:
        cap = int(pltpu.get_tpu_info().vmem_capacity_bytes)
    except Exception:
        cap = 64 * _MIB  # conservative (v7x-sized) fallback
    return int(min(0.70 * cap, 100 * _MIB))


def _sublane_multiple(itemsize):
    # Packed-dtype second-minor tiling: f32 -> 8, bf16 -> 16, int8/fp8 -> 32.
    return 8 * max(4 // int(itemsize), 1)


def _fold_factor(C, HW):
    """Lane-fold factor F so the lane axis (F*C) is a multiple of 128."""
    F = 128 // math.gcd(C, 128)
    if F > 1 and HW % F == 0:
        return F
    return 1


def _fold_replicas(ss, C, F):
    """Sum the F channel replicas so every lane holds its channel's total."""
    if F == 1:
        return ss
    axis = ss.ndim - 1  # pltpu.roll needs a non-negative axis index
    shift = C
    while shift < C * F:
        ss = ss + pltpu.roll(ss, shift=shift, axis=axis)
        shift *= 2
    return ss


def _block_vmem_bytes(rows, lanes, itemsize):
    # Double-buffered in + out blocks; extra f32 temporaries only for narrow
    # dtypes (for f32 the upcast is a no-op and the square fuses into the sum).
    per_elem = 4 * itemsize + (0 if itemsize >= 4 else 8)
    return rows * lanes * per_elem + 2 * _MIB


# --------------------------- single-pass kernel ---------------------------- #
def _grn_single_pass_kernel(x_ref, gamma_ref, beta_ref, o_ref, *, C, F, eps):
    # x_ref: (1, HW // F, F*C);  gamma/beta: (1, 1, F*C)
    xf = x_ref[...].astype(jnp.float32)
    ss = jnp.sum(xf * xf, axis=1, keepdims=True)            # (1, 1, F*C)
    ss = _fold_replicas(ss, C, F)                            # per-channel totals
    gx = jnp.sqrt(ss)
    # Each channel appears F times, so the full-lane mean == per-channel mean.
    gx_mean = jnp.mean(gx, axis=-1, keepdims=True)
    nx = gx * pl.reciprocal(gx_mean + eps)                   # exact recip (EUP)
    scale = gamma_ref[...].astype(jnp.float32) * nx + 1.0    # fused affine
    out = x_ref[...].astype(jnp.float32) * scale + beta_ref[...].astype(jnp.float32)
    o_ref[...] = out.astype(o_ref.dtype)


# ------------------ fused two-phase (reduce -> apply) kernel ---------------- #
def _grn_two_phase_kernel(x_ref, gamma_ref, beta_ref, o_ref, scale_ref, ss_ref,
                          *, C, F, eps, tile_rows, valid_last):
    phase = pl.program_id(1)
    t = pl.program_id(2)
    T = pl.num_programs(2)

    @pl.when((phase == 0) & (t == 0))
    def _():
        ss_ref[...] = jnp.zeros_like(ss_ref)

    @pl.when(phase == 0)
    def _():
        xf = x_ref[...].astype(jnp.float32)
        sq = xf * xf
        if valid_last != tile_rows:
            # Mask the padded rows of the (possibly partial) last tile.
            limit = jnp.where(t == T - 1, valid_last, tile_rows)
            row_ids = lax.broadcasted_iota(jnp.int32, sq.shape, 1)
            sq = jnp.where(row_ids < limit, sq, 0.0)
        ss_ref[...] += jnp.sum(sq, axis=1, keepdims=True)

        @pl.when(t == T - 1)
        def _():
            ss = _fold_replicas(ss_ref[...], C, F)
            gx = jnp.sqrt(ss)
            gx_mean = jnp.mean(gx, axis=-1, keepdims=True)
            nx = gx * pl.reciprocal(gx_mean + eps)
            scale_ref[...] = gamma_ref[...].astype(jnp.float32) * nx + 1.0

    @pl.when(phase == 1)
    def _():
        out = (x_ref[...].astype(jnp.float32) * scale_ref[...]
               + beta_ref[...].astype(jnp.float32))
        o_ref[...] = out.astype(o_ref.dtype)


# -------------------------------- wrapper ----------------------------------- #
def grn_forward(x, gamma, beta, *, eps=1e-4, vmem_budget_bytes=None,
                force_two_pass=False, tile_rows=None):
    """GRN forward.  x: (N, H, W, C) NHWC;  gamma, beta: (C,)."""
    N, H, W, C = x.shape
    HW = H * W
    F = _fold_factor(C, HW)
    lanes = F * C
    rows = HW // F
    itemsize = jnp.dtype(x.dtype).itemsize
    sub = _sublane_multiple(itemsize)

    if vmem_budget_bytes is None:
        vmem_budget_bytes = _vmem_budget_bytes()
    vmem_limit = int(max(vmem_budget_bytes, 32 * _MIB))

    x_flat = x.reshape(N, rows, lanes)                       # lane-dense layout
    gamma_l = jnp.tile(gamma.reshape(-1), F).reshape(1, 1, lanes)
    beta_l = jnp.tile(beta.reshape(-1), F).reshape(1, 1, lanes)

    single_bytes = _block_vmem_bytes(rows, lanes, itemsize)

    if not force_two_pass and single_bytes <= vmem_budget_bytes:
        # ---- single pass: full spatial block per batch element, x read once ----
        # TODO(synk): add a resident-x path (memory_space=pl.ANY + manual DMA /
        # emit_pipeline into one persistent VMEM slab) to extend the 2x-HBM
        # regime on v7x, and split a single batch element across the two
        # TensorCores when N == 1.
        out_flat = pl.pallas_call(
            functools.partial(_grn_single_pass_kernel, C=C, F=F, eps=eps),
            out_shape=jax.ShapeDtypeStruct((N, rows, lanes), x.dtype),
            grid_spec=pltpu.PrefetchScalarGridSpec(
                num_scalar_prefetch=0,
                grid=(N,),
                in_specs=[
                    pl.BlockSpec((1, rows, lanes), lambda n: (n, 0, 0)),
                    pl.BlockSpec((1, 1, lanes), lambda n: (0, 0, 0)),
                    pl.BlockSpec((1, 1, lanes), lambda n: (0, 0, 0)),
                ],
                out_specs=pl.BlockSpec((1, rows, lanes), lambda n: (n, 0, 0)),
            ),
            compiler_params=pltpu.CompilerParams(
                dimension_semantics=("parallel",),
                vmem_limit_bytes=vmem_limit,
            ),
        )(x_flat, gamma_l, beta_l)
        return out_flat.reshape(N, H, W, C)

    # ---- fused two-phase (reduce then apply), spatially tiled ----
    per_elem = 4 * itemsize + (0 if itemsize >= 4 else 8)
    cap_rows = max((vmem_budget_bytes - 2 * _MIB) // (lanes * per_elem), sub)
    if tile_rows is None:
        tile_rows = min(rows, cap_rows)
        tile_rows = max((tile_rows // sub) * sub, sub)
    tile_rows = int(min(tile_rows, rows))
    T = pl.cdiv(rows, tile_rows)
    valid_last = rows - (T - 1) * tile_rows

    out_flat = pl.pallas_call(
        functools.partial(_grn_two_phase_kernel, C=C, F=F, eps=eps,
                          tile_rows=tile_rows, valid_last=valid_last),
        out_shape=jax.ShapeDtypeStruct((N, rows, lanes), x.dtype),
        grid_spec=pltpu.PrefetchScalarGridSpec(
            num_scalar_prefetch=0,
            grid=(N, 2, T),
            in_specs=[
                pl.BlockSpec((1, tile_rows, lanes), lambda n, p, t: (n, t, 0)),
                pl.BlockSpec((1, 1, lanes), lambda n, p, t: (0, 0, 0)),
                pl.BlockSpec((1, 1, lanes), lambda n, p, t: (0, 0, 0)),
            ],
            # During phase 0 the output block index is pinned to (n, 0, 0);
            # it is only flushed after phase 1 writes it -> no garbage stores.
            out_specs=pl.BlockSpec((1, tile_rows, lanes),
                                   lambda n, p, t: (n, t * p, 0)),
            scratch_shapes=[pltpu.VMEM((1, 1, lanes), jnp.float32),   # scale
                            pltpu.VMEM((1, 1, lanes), jnp.float32)],  # sum-sq
        ),
        compiler_params=pltpu.CompilerParams(
            dimension_semantics=("parallel", "arbitrary", "arbitrary"),
            vmem_limit_bytes=vmem_limit,
        ),
    )(x_flat, gamma_l, beta_l)

    return out_flat.reshape(N, H, W, C)


# ------------------------------ reference ----------------------------------- #
def grn_reference(x, gamma, beta):
    """Plain-JAX reference mirroring the PyTorch forward (eps = 1e-4)."""
    xf = x.astype(jnp.float32)
    gx = jnp.sqrt(jnp.sum(xf * xf, axis=(1, 2), keepdims=True))
    nx = gx / (jnp.mean(gx, axis=-1, keepdims=True) + 1e-4)
    out = (gamma.reshape(1, 1, 1, -1) * (xf * nx)
           + beta.reshape(1, 1, 1, -1) + xf)
    return out.astype(x.dtype)


if __name__ == "__main__":
    key = jax.random.PRNGKey(0)

    def check(x, gamma, beta, **kw):
        out = jax.block_until_ready(grn_forward(x, gamma, beta, **kw))
        ref = grn_reference(x, gamma, beta)
        assert out.shape == x.shape
        err = float(jnp.max(jnp.abs(out.astype(jnp.float32) - ref.astype(jnp.float32))))
        assert jnp.allclose(out.astype(jnp.float32), ref.astype(jnp.float32),
                            atol=1e-4, rtol=1e-4), err

    # Case 1: NHWC, C=32 -> lane-dense fold F=4 (128 lanes), single-pass path.
    N, H, W, C = 2, 16, 16, 32
    kx, kg, kb = jax.random.split(key, 3)
    x = jax.random.normal(kx, (N, H, W, C), dtype=jnp.float32)
    # Module initializes gamma/beta to zeros; use small non-zero values so the
    # affine path is actually exercised.
    gamma = 0.1 * jax.random.normal(kg, (C,), dtype=jnp.float32)
    beta = 0.1 * jax.random.normal(kb, (C,), dtype=jnp.float32)
    check(x, gamma, beta)

    # Case 2: same inputs through the fused two-phase path (divisible tiling).
    check(x, gamma, beta, force_two_pass=True, tile_rows=16)

    # Case 3: non-divisible tiling -> exercises the masked last tile.
    check(x, gamma, beta, force_two_pass=True, tile_rows=24)

    # Case 4: C=48 -> generalized fold F=8 (384 lanes), single-pass path.
    C3 = 48
    x3 = jax.random.normal(kx, (1, 8, 8, C3), dtype=jnp.float32)
    g3 = 0.1 * jax.random.normal(kg, (C3,), dtype=jnp.float32)
    b3 = 0.1 * jax.random.normal(kb, (C3,), dtype=jnp.float32)
    check(x3, g3, b3)

    # Case 5: C=48 through the fused two-phase path (fold inside finalize).
    x5 = jax.random.normal(kb, (2, 16, 16, C3), dtype=jnp.float32)
    check(x5, g3, b3, force_two_pass=True, tile_rows=8)

    print("KERNEL_OK")
</pallas_src>

<mosaic_0001>
module attributes {stable_mosaic.version = 11 : i64} {
  func.func @_grn_single_pass_kernel(%arg0: i32, %arg1: memref<1x64x128xf32, #tpu.memory_space<vmem>>, %arg2: memref<1x1x128xf32, #tpu.memory_space<vmem>>, %arg3: memref<1x1x128xf32, #tpu.memory_space<vmem>>, %arg4: memref<1x64x128xf32, #tpu.memory_space<vmem>>) attributes {dimension_semantics = [#tpu.dimension_semantics<parallel>], iteration_bounds = array<i64: 2>, scalar_prefetch = 0 : i64, scratch_operands = 0 : i64, tpu.core_type = #tpu.core_type<tc>, window_params = [{transform_indices = @transform_0, window_bounds = array<i64: 1, 64, 128>}, {pipeline_mode = #tpu.pipeline_mode<synchronous>, transform_indices = @transform_1, window_bounds = array<i64: 1, 1, 128>}, {pipeline_mode = #tpu.pipeline_mode<synchronous>, transform_indices = @transform_2, window_bounds = array<i64: 1, 1, 128>}, {transform_indices = @transform_3, window_bounds = array<i64: 1, 64, 128>}]} {
    %c0 = arith.constant 0 : index
    %c0_0 = arith.constant 0 : index
    %c0_1 = arith.constant 0 : index
    %0 = vector.load %arg1[%c0, %c0_0, %c0_1] : memref<1x64x128xf32, #tpu.memory_space<vmem>>, vector<1x64x128xf32>
    %1 = arith.mulf %0, %0 : vector<1x64x128xf32>
    %cst = arith.constant dense<0.000000e+00> : vector<1x128xf32>
    %2 = vector.multi_reduction <add>, %1, %cst [1] : vector<1x64x128xf32> to vector<1x128xf32>
    %3 = vector.shape_cast %2 : vector<1x128xf32> to vector<1x1x128xf32>
    %c32_i32 = arith.constant 32 : i32
    %4 = tpu.dynamic_rotate %3 by %c32_i32 dim 2 : vector<1x1x128xf32>, i32 -> vector<1x1x128xf32>
    %5 = arith.addf %3, %4 : vector<1x1x128xf32>
    %c64_i32 = arith.constant 64 : i32
    %6 = tpu.dynamic_rotate %5 by %c64_i32 dim 2 : vector<1x1x128xf32>, i32 -> vector<1x1x128xf32>
    %7 = arith.addf %5, %6 : vector<1x1x128xf32>
    %8 = math.sqrt %7 : vector<1x1x128xf32>
    %cst_2 = arith.constant dense<0.000000e+00> : vector<1x1xf32>
    %9 = vector.multi_reduction <add>, %8, %cst_2 [2] : vector<1x1x128xf32> to vector<1x1xf32>
    %10 = vector.shape_cast %9 : vector<1x1xf32> to vector<1x1x1xf32>
    %cst_3 = arith.constant 1.280000e+02 : f32
    %11 = vector.broadcast %cst_3 : f32 to vector<1x1x1xf32>
    %12 = arith.divf %10, %11 : vector<1x1x1xf32>
    %cst_4 = arith.constant 9.99999974E-5 : f32
    %13 = vector.broadcast %cst_4 : f32 to vector<1x1x1xf32>
    %14 = arith.addf %12, %13 : vector<1x1x1xf32>
    %15 = tpu.reciprocal %14 : vector<1x1x1xf32> -> vector<1x1x1xf32>
    %16 = vector.broadcast %15 : vector<1x1x1xf32> to vector<1x1x128xf32>
    %17 = arith.mulf %8, %16 : vector<1x1x128xf32>
    %c0_5 = arith.constant 0 : index
    %c0_6 = arith.constant 0 : index
    %c0_7 = arith.constant 0 : index
    %18 = vector.load %arg2[%c0_5, %c0_6, %c0_7] : memref<1x1x128xf32, #tpu.memory_space<vmem>>, vector<1x1x128xf32>
    %19 = arith.mulf %18, %17 : vector<1x1x128xf32>
    %cst_8 = arith.constant 1.000000e+00 : f32
    %20 = vector.broadcast %cst_8 : f32 to vector<1x1x128xf32>
    %21 = arith.addf %19, %20 : vector<1x1x128xf32>
    %c0_9 = arith.constant 0 : index
    %c0_10 = arith.constant 0 : index
    %c0_11 = arith.constant 0 : index
    %22 = vector.load %arg1[%c0_9, %c0_10, %c0_11] : memref<1x64x128xf32, #tpu.memory_space<vmem>>, vector<1x64x128xf32>
    %23 = vector.broadcast %21 : vector<1x1x128xf32> to vector<1x64x128xf32>
    %24 = arith.mulf %22, %23 : vector<1x64x128xf32>
    %c0_12 = arith.constant 0 : index
    %c0_13 = arith.constant 0 : index
    %c0_14 = arith.constant 0 : index
    %25 = vector.load %arg3[%c0_12, %c0_13, %c0_14] : memref<1x1x128xf32, #tpu.memory_space<vmem>>, vector<1x1x128xf32>
    %26 = vector.broadcast %25 : vector<1x1x128xf32> to vector<1x64x128xf32>
    %27 = arith.addf %24, %26 : vector<1x64x128xf32>
    %c0_15 = arith.constant 0 : index
    %c0_16 = arith.constant 0 : index
    %c0_17 = arith.constant 0 : index
    %28 = vector.load %arg4[%c0_15, %c0_16, %c0_17] : memref<1x64x128xf32, #tpu.memory_space<vmem>>, vector<1x64x128xf32>
    tpu.vector_store %arg4[%c0_15, %c0_16, %c0_17], %27 {strides = array<i32>} : memref<1x64x128xf32, #tpu.memory_space<vmem>>, vector<1x64x128xf32>,
    return
  }
  func.func @transform_0(%arg0: i32) -> (i32, i32, i32) {
    %c0_i32 = arith.constant 0 : i32
    %c0_i32_0 = arith.constant 0 : i32
    %c0_i32_1 = arith.constant 0 : i32
    return %arg0, %c0_i32, %c0_i32_0 : i32, i32, i32
  }
  func.func @transform_1(%arg0: i32) -> (i32, i32, i32) {
    %c0_i32 = arith.constant 0 : i32
    %c0_i32_0 = arith.constant 0 : i32
    %c0_i32_1 = arith.constant 0 : i32
    %c0_i32_2 = arith.constant 0 : i32
    return %c0_i32, %c0_i32_0, %c0_i32_1 : i32, i32, i32
  }
  func.func @transform_2(%arg0: i32) -> (i32, i32, i32) {
    %c0_i32 = arith.constant 0 : i32
    %c0_i32_0 = arith.constant 0 : i32
    %c0_i32_1 = arith.constant 0 : i32
    %c0_i32_2 = arith.constant 0 : i32
    return %c0_i32, %c0_i32_0, %c0_i32_1 : i32, i32, i32
  }
  func.func @transform_3(%arg0: i32) -> (i32, i32, i32) {
    %c0_i32 = arith.constant 0 : i32
    %c0_i32_0 = arith.constant 0 : i32
    %c0_i32_1 = arith.constant 0 : i32
    return %arg0, %c0_i32, %c0_i32_0 : i32, i32, i32
  }
}

</mosaic_0001>

<bundles_post_ra>
// kernel: tpu_custom_call.1
= control target key start
LH: loop header
LB: loop body
LE: loop exit
PB: predicated region body
PF: predicated region fallthrough
CT: control target
= control target key end

     0   :  { %8 = vsyncpa [#allocation3], 0  ;;  %s758_s0 = inlined_call_operand.hbm [shape: f32[2,64,128], index: 0, kind: input, shape index: {}]   ;;  %s759_s1 = inlined_call_operand.vmem [shape: f32[1,1,128], index: 1, kind: input, shape index: {}]   ;;  %s760_s2 = inlined_call_operand.vmem [shape: f32[1,1,128], index: 2, kind: input, shape index: {}]   ;;  %s761_s3 = inlined_call_operand.hbm [shape: f32[2,64,128], index: 3, kind: output, shape index: {}]  }
   0x1   :  { %10 = vsyncpa [#allocation3 + $0x1], 0 }
   0x2   :  { %11 = vsyncpa [#allocation4], 0 }
   0x3   :  { %13 = vsyncpa [#allocation4 + $0x1], 0  ;;  %s566_s12 = smov 0   ;;  %s568_s13 = smov 0  }
   0x4   :  { %s570_s14 = smov 0   ;;  %s572_s15 = smov 0  }
   0x5 LB: > { %s587_s16 = sadd.s32 4294967295, %s536_s15   ;;  %s367_s17 = sadd.s32 4294967294, %s536_s15   ;;  %s536_s15 = sphi %s572_s15, %s774_s15   ;;  %s532_s14 = sphi %s570_s14, %s773_s14   ;;  %s528_s13 = sphi %s568_s13, %s772_s13   ;;  %s524_s12 = sphi %s566_s12, %s771_s12  }
   0x6   : > { %s591_s18 = sadd.s32 1, %s536_s15   ;;  %s26_s19 = sadd.s32 1, %s532_s14 }
   0x7   : > { %s23_s20 = ssub.s32 %s536_s15, %s591_s18  ;;  %p33_p0 = scmp.ne.s32.totalorder %s532_s14, %s528_s13 }
   0x8   : > { %p24_p1 = scmp.eq.s32.totalorder %s23_s20, 0  ;;  %p34_p2 = scmp.eq.s32.totalorder %s536_s15, 0 }
   0x9   : > { %p39_p3 = scmp.ne.s32.totalorder %s528_s13, %s524_s12  ;;  %p40_p4 = scmp.eq.s32.totalorder %s587_s16, 0 }
   0xa   : > { %s603_s21 = scalar_select %p24_p1, %s532_s14, %s26_s19  }
   0xb   : > { %p605_p5 = por %p34_p2, %p33_p0  ;;  %p609_p6 = por %p40_p4, %p39_p3 }
   0xc   : > { %p105_p7 = scmp.eq.s32.totalorder %s587_s16, 1  ;;  %p111_p8 = scmp.eq.s32.totalorder %s367_s17, 1 }
   0xd   : > { %p396_p10 = scmp.lt.s32.totalorder %s536_s15, 2  ;;  %s137_s26 = sand.u32 1, %s532_s14  }
   0xe   : > { %p616_p11 = por %p105_p7, %p33_p0  ;;  %p620_p12 = por %p111_p8, %p39_p3 }
   0xf   : > { %s382_s27 = sshll.u32 %s536_s15, 10  ;;  %s370_s28 = sshll.u32 %s137_s26, 6 }
  0x10   : > { %s765_s24 = scalar_select %p616_p11, 1, 0 }
  0x11   : > { %s766_s25 = scalar_select %p620_p12, 1, 0 }
  0x12   : > { %s629_s4 = scalar_lea.hbm %s758_s0, %s382_s27  ;;  %s141_s5 = scalar_lea.vmem [#allocation2], %s370_s28 }
  0x13   : > { %s148_s6 = sshll.u32 %s141_s5, 4  ;;  %p633_p13 = pnand %p396_p10, %p605_p5  ;;  %s637_s6 = int_to_ptr.vmem [resolvable:$true] %s148_s6 }
  0x14   : > { %s639_s8 = scalar_lea.sflag [#allocation3], %s137_s26  ;;  %s440_s9 = scalar_lea.hbm %s629_s4, 1024 }
  0x15   : > { %p441_p0 = scmp.ne.s32.totalorder %s629_s4, %s440_s9  ;;  %p442_p1 = pneg %p633_p13 }
  0x16   : > { %s445_s17 = scalar_lea.hbm %s758_s0, 2048  ;;  %p446_p4 = scmp.lt.u32.totalorder %s629_s4, %s758_s0 }
  0x17   : > { %p443_p2 = pnand %p442_p1, %p441_p0  ;;  %p447_p5 = scmp.lt.u32.totalorder %s445_s17, %s440_s9 }
  0x18   : > { %p449_p8 = scmp.lt.u32.totalorder %s440_s9, %s629_s4 }
  0x19   : > { %p444_p3 = pneg %p443_p2  ;;  %p448_p7 = por %p447_p5, %p446_p4 }
  0x1b   : > { %p450_p10 = por %p449_p8, %p448_p7 }
  0x1d   : > { %p451_p9 = pnand %p450_p10, %p444_p3 }
  0x1f   : > { %454 = shalt.err (!%p451_p9)
}
  0x20   : > { %s455_s22 = scalar_lea.vmem %s637_s6, 1024  ;;  %s538_s26 = smov [#allocation2]  }
  0x21   : > { %p456_p0 = scmp.ne.s32.totalorder %s637_s6, %s455_s22  ;;  %s460_s27 = sshll.u32 %s538_s26, 4  ;;  %s461_s27 = int_to_ptr.vmem [resolvable:$false] %s460_s27 }
  0x22   : > { %s462_s28 = scalar_lea.vmem %s461_s27, 2048  ;;  %p463_p11 = scmp.lt.s32.totalorder %s637_s6, %s461_s27 }
  0x23   : > { %p458_p2 = pnand %p456_p0, %p442_p1  ;;  %p464_p4 = scmp.lt.s32.totalorder %s462_s28, %s455_s22 }
  0x25   : > { %p459_p12 = pneg %p458_p2  ;;  %p465_p5 = por %p464_p4, %p463_p11 }
  0x27   : > { %p466_p7 = pnand %p465_p5, %p459_p12 }
  0x29   : > { %469 = shalt.err (!%p466_p7)
}
  0x2a   : > { %s539_s29 = smov 128   ;;  %s540_s30 = smov 8  }
  0x2b   : > { %391 = dma.hbm_to_vmem [thread:$0]  (!%p633_p13), %s629_s4, 1024, %s637_s6, %s639_s8, %s539_s29, %s539_s29, %s540_s30  }
  0x2c   : > { %p373_p9 = scmp.ge.s32.totalorder %s536_s15, 1  ;;  %p156_p1 = scmp.lt.s32.totalorder %s536_s15, 3 }
  0x2e   : > { %p157_p3 = pnand %p373_p9, %p156_p1 }
  0x2f   : > { %s670_s5 = sand.u32 (!%p157_p3), 1, %s528_s13  }
  0x30   : > { %160 = sbr.rel (%p157_p3) target bundleno = 522 (0x20a), region = 32  ;;  %s374_s9 = sshll.u32 (!%p157_p3), %s670_s5, 6 }
  0x31   : > { %s163_s10 = scalar_lea.sflag (!%p157_p3), [#allocation3], %s670_s5  ;;  %s166_s11 = scalar_lea.vmem (!%p157_p3), [#allocation2], %s374_s9 }
  0x37   : > { %515 = dma.done.wait (%p609_p6), %s163_s10, 1024  }
  0x38   : > { %517 = vsyncadd (%p609_p6), %s163_s10, 4294966272  ;;  %v680_v0 = vld [vmem:[%s166_s11] sm:$0xff]  ;;  %v682_v1 = vld [vmem:[%s166_s11 + $0x8] sm:$0xff]  ;;  %s541_s23 = smov 32   ;;  %s542_s4 = smov 64   ;;  %vm231_vm1 = vcmask 1040384   ;;  %v244_v42 = vlaneseq }
  0x39   : > { %v684_v2 = vld [vmem:[%s166_s11 + $0x10] sm:$0xff]  ;;  %v686_v3 = vld [vmem:[%s166_s11 + $0x18] sm:$0xff]  ;;  %v197_v4 = vmul.f32 %v680_v0, %v680_v0  ;;  %v198_v5 = vmul.f32 %v682_v1, %v682_v1  ;;  %v193_v7 = vld [vmem:[%s166_s11 + $0x20] sm:$0xff]  ;;  %s383_s19 = sshll.u32 %s587_s16, 10  ;;  %s188_s20 = scalar_lea.vmem [#allocation5], %s374_s9 }
  0x3a   : > { %v199_v6 = vmul.f32 %v684_v2, %v684_v2  ;;  %v200_v8 = vmul.f32 %v686_v3, %v686_v3  ;;  %v194_v10 = vld [vmem:[%s166_s11 + $0x28] sm:$0xff]  ;;  %v201_v11 = vmul.f32 %v193_v7, %v193_v7  ;;  %v195_v13 = vld [vmem:[%s166_s11 + $0x30] sm:$0xff]  ;;  %v196_v16 = vld [vmem:[%s166_s11 + $0x38] sm:$0xff]  ;;  %v245_v43 = vshrl.u32 %v244_v42, 7  ;;  %s294_s22 = sshll.u32 %s188_s20, 4  ;;  %s712_s27 = scalar_lea.hbm %s761_s3, %s383_s19  ;;  %s714_s22 = int_to_ptr.vmem [resolvable:$true] %s294_s22 }
  0x3b   : > { %v205_v9 = vadd.f32 %v198_v5, %v197_v4  ;;  %v202_v14 = vmul.f32 %v194_v10, %v194_v10  ;;  %v203_v17 = vmul.f32 %v195_v13, %v195_v13  ;;  %v204_v19 = vmul.f32 %v196_v16, %v196_v16  ;;  %v240_v45 = vld [vmem:[%s759_s1] sm:$0x1]  ;;  %s281_s28 = scalar_lea.sflag [#allocation4], %s670_s5  ;;  %s470_s29 = scalar_lea.vmem %s714_s22, 1024 }
  0x3c   : > { %v246_v47 = vsub.s32 0, %v245_v43  ;;  %v376_v51 = vld [vmem:[%s760_s2] ss:$0 sm:$0xff]  ;;  %p471_p6 = scmp.ne.s32.totalorder %s714_s22, %s470_s29  ;;  %p768_p11 = scmp.ne.s32.totalorder %s765_s24, 0 }
  0x3d   : > { %v206_v12 = vadd.f32 %v205_v9, %v199_v6  ;;  %s543_s30 = smov [#allocation5]  }
  0x3e   : > { %p472_p12 = pnand %p471_p6, %p768_p11  ;;  %s474_s9 = sshll.u32 %s543_s30, 4  ;;  %s475_s9 = int_to_ptr.vmem [resolvable:$false] %s474_s9 }
  0x3f   : > { %v207_v15 = vadd.f32 %v206_v12, %v200_v8  ;;  %s476_s10 = scalar_lea.vmem %s475_s9, 2048  ;;  %p477_p8 = scmp.lt.s32.totalorder %s714_s22, %s475_s9 }
  0x40   : > { %p473_p13 = pneg %p472_p12  ;;  %p478_p10 = scmp.lt.s32.totalorder %s476_s10, %s470_s29 }
  0x41   : > { %v208_v18 = vadd.f32 %v207_v15, %v201_v11 }
  0x42   : > { %p479_p0 = por %p478_p10, %p477_p8 }
  0x43   : > { %v209_v20 = vadd.f32 %v208_v18, %v202_v14 }
  0x44   : > { %p480_p2 = pnand %p479_p0, %p473_p13 }
  0x45   : > { %v210_v21 = vadd.f32 %v209_v20, %v203_v17 }
  0x47   : > { %v211_v22 = vadd.f32 %v210_v21, %v204_v19 }
  0x49   : > { %v212_v23 = vrot.slane %v211_v22, 4 }
  0x4b   : > { %v213_v24 = vadd.f32 %v212_v23, %v211_v22 }
  0x4d   : > { %v214_v25 = vrot.slane %v213_v24, 2 }
  0x4f   : > { %v215_v26 = vadd.f32 %v214_v25, %v213_v24 }
  0x51   : > { %v216_v27 = vrot.slane %v215_v26, 1 }
  0x53   : > { %v217_v28 = vadd.f32 %v216_v27, %v215_v26 }
  0x55   : > { %218 = vrot.lane.b32.xlu0 %v217_v28, %s541_s23 }
  0xc7   : > { %v219_v29 = vpop.permute.xlu0 %218 }
  0xc8   : > { %v220_v30 = vadd.f32 %v219_v29, %v217_v28 }
  0xca   : > { %221 = vrot.lane.b32.xlu0 %v220_v30, %s542_s4 }
 0x13c   : > { %v222_v31 = vpop.permute.xlu0 %221 }
 0x13d   : > { %v223_v32 = vadd.f32 %v222_v31, %v220_v30 }
 0x13f   : > { %436 = vrsqrt.f32 %v223_v32  ;;  %vm226_vm0 = vcmp.eq.f32.partialorder %v223_v32, inf  ;;  %v229_v35 = vand.u32 2147483648, %v223_v32  ;;  %vm228_vm2 = vcmp.eq.f32.partialorder %v223_v32, 0.0 }
 0x149   : > { %v437_v33 = vpop.eup %436 }
 0x14a   : > { %v225_v34 = vmul.f32 %v437_v33, %v223_v32 }
 0x14c   : > { %v227_v36 = vsel %vm226_vm0, %v223_v32, %v225_v34 }
 0x14d   : > { %v230_v37 = vsel %vm228_vm2, %v229_v35, %v227_v36 }
 0x14e   : > { %v232_v38 = vsel %vm231_vm1, %v230_v37, 0.0 }
 0x14f   : > { %233 = vadd.xlane.f32.xlu1 %v232_v38 }
 0x1dc   : > { %v234_v39 = vpop.xlane.xlu1 %233 }
 0x1dd   : > { %v236_v40 = vmul.f32 0.0078125, %v234_v39 }
 0x1df   : > { %v237_v41 = vadd.f32 0.0001, %v236_v40 }
 0x1e1   : > { %438 = vrcp.f32 %v237_v41 }
 0x1eb   : > { %v439_v44 = vpop.eup %438 }
 0x1ec   : > { %v239_v46 = vmul.f32 %v439_v44, %v230_v37 }
 0x1ee   : > { %v241_v48 = vmul.f32 %v240_v45, %v239_v46 }
 0x1f0   : > { %v242_v49 = vadd.f32 1.0, %v241_v48 }
 0x1f2   : > { %v247_v50 = vrot.slane %v242_v49, %v246_v47 }
 0x1f4   : > { %v249_v52 = vmul.f32 %v247_v50, %v680_v0  ;;  %v250_v53 = vmul.f32 %v247_v50, %v682_v1  ;;  %v251_v54 = vmul.f32 %v247_v50, %v684_v2  ;;  %v252_v55 = vmul.f32 %v247_v50, %v686_v3 }
 0x1f5   : > { %v253_v56 = vmul.f32 %v247_v50, %v193_v7  ;;  %v254_v57 = vmul.f32 %v247_v50, %v194_v10  ;;  %v255_v58 = vmul.f32 %v247_v50, %v195_v13  ;;  %v256_v59 = vmul.f32 %v247_v50, %v196_v16 }
 0x1f6   : > { %v264_v60 = vadd.f32 %v376_v51, %v249_v52  ;;  %v265_v61 = vadd.f32 %v376_v51, %v250_v53  ;;  %v266_v62 = vadd.f32 %v376_v51, %v251_v54  ;;  %v267_v63 = vadd.f32 %v376_v51, %v252_v55 }
 0x1f7   : > { %v268_v0 = vadd.f32 %v376_v51, %v253_v56  ;;  %v269_v1 = vadd.f32 %v376_v51, %v254_v57  ;;  %v270_v2 = vadd.f32 %v376_v51, %v255_v58  ;;  %v271_v3 = vadd.f32 %v376_v51, %v256_v59 }
 0x1f8   : > { %272 = vst [vmem:[%s188_s20] sm:$0xff] %v264_v60  ;;  %273 = vst [vmem:[%s188_s20 + $0x8] sm:$0xff] %v265_v61 }
 0x1f9   : > { %274 = vst [vmem:[%s188_s20 + $0x10] sm:$0xff] %v266_v62  ;;  %275 = vst [vmem:[%s188_s20 + $0x18] sm:$0xff] %v267_v63 }
 0x1fa   : > { %276 = vst [vmem:[%s188_s20 + $0x20] sm:$0xff] %v268_v0  ;;  %277 = vst [vmem:[%s188_s20 + $0x28] sm:$0xff] %v269_v1 }
 0x1fb   : > { %278 = vst [vmem:[%s188_s20 + $0x30] sm:$0xff] %v270_v2  ;;  %279 = vst [vmem:[%s188_s20 + $0x38] sm:$0xff] %v271_v3 }
 0x1fc   : > { %483 = shalt.err (!%p480_p2)
}
 0x1fd   : > { %s484_s11 = scalar_lea.hbm %s712_s27, 1024  ;;  %s488_s6 = scalar_lea.hbm %s761_s3, 2048 }
 0x1fe   : > { %p485_p4 = scmp.ne.s32.totalorder %s712_s27, %s484_s11  ;;  %p489_p9 = scmp.lt.u32.totalorder %s712_s27, %s761_s3 }
 0x1ff   : > { %p490_p1 = scmp.lt.u32.totalorder %s488_s6, %s484_s11  ;;  %p492_p6 = scmp.lt.u32.totalorder %s484_s11, %s712_s27 }
 0x200   : > { %p486_p5 = pnand %p485_p4, %p768_p11 }
 0x201   : > { %p491_p3 = por %p490_p1, %p489_p9 }
 0x202   : > { %p487_p7 = pneg %p486_p5 }
 0x203   : > { %p493_p12 = por %p492_p6, %p491_p3 }
 0x205   : > { %p494_p13 = pnand %p493_p12, %p487_p7 }
 0x207   : > { %497 = shalt.err (!%p494_p13)
}
 0x208   : > { %s544_s17 = smov 128   ;;  %s545_s19 = smov 8  }
 0x209   : > { %386 = dma.vmem_to_hbm [thread:$0]  (%p768_p11), %s714_s22, 1024, %s712_s27, %s281_s28, %s544_s17, %s544_s17, %s545_s19  }
 0x20a PF: > { %s309_s20 = sand.u32 1, %s524_s12   ;;  %p769_p8 = scmp.ne.s32.totalorder %s766_s25, 0 }
 0x20b   : > { %p770_p10 = scmp.ge.s32.totalorder %s536_s15, 2  ;;  %s310_s16 = scalar_lea.sflag [#allocation4], %s309_s20 }
 0x20d   : > { %p393_p0 = pnand %p770_p10, %p769_p8 }
 0x20f   : > { %519 = dma.done.wait (!%p393_p0), %s310_s16, 1024  }
 0x210   : > { %521 = vsyncadd (!%p393_p0), %s310_s16, 4294966272  ;;  %p16_p2 = scmp.ge.s32.totalorder %s591_s18, 4   ;;  %s771_s12 = smov %s528_s13 }
 0x211   : > { %s772_s13 = smov %s532_s14  ;;  %s773_s14 = smov %s603_s21 }
 0x212   : > { %s774_s15 = smov %s591_s18  ;;  %18 = sbr.rel (!%p16_p2) target bundleno = 5 (0x5), region = 77 }
 0x219   :  { %315 = vsyncpa [#allocation3], 1 }
 0x21a   :  { %317 = vsyncpa [#allocation3 + $0x1], 1 }
 0x21b   :  { %318 = vsyncpa [#allocation4], 1 }
 0x21c   :  { %320 = vsyncpa [#allocation4 + $0x1], 1 }

</bundles_post_ra>
